<compile_context>
chip_gen: v7x
topology: tpu7x:2x2x1
jax: 0.10.0
libtpu: 0.0.40
codegen_flags: <defaults>
</compile_context>

<pallas_src>
import jax
import jax.numpy as jnp
from jax import lax
from jax.experimental import pallas as pl
from jax.experimental.pallas import tpu as pltpu


# ---------------------------------------------------------------------------
# Small helpers
# ---------------------------------------------------------------------------
def _round_up(v, m):
    return (v + m - 1) // m * m


def _fold_bn(bn_params, eps=1e-5):
    gamma, beta, mean, var = bn_params
    scale = gamma / jnp.sqrt(var + eps)
    bias = beta - mean * scale
    return scale.astype(jnp.float32), bias.astype(jnp.float32)


def _concrete_all_positive(v):
    """True iff v is concrete (a jit closure constant) and elementwise > 0."""
    try:
        return bool(jnp.all(v > 0))
    except Exception:  # tracer -> cannot decide at trace time, be conservative
        return False


_VMEM_BUDGET = 48 * 1024 * 1024   # stays under v7x's 64 MiB physical VMEM


def _vmem_estimate(tm, tn, tk, nk, out_bytes):
    return (2 * (tm * tk + tk * tn) * 2         # double-buffered bf16 A/B tiles
            + 2 * tm * tn * out_bytes           # double-buffered output tile
            + (tm * tn * 4 if nk > 1 else 0)    # f32 accumulator (multi-k only)
            + 4 * tk * 2 + 8 * tn * 4)          # bias rows (generous)


# ---------------------------------------------------------------------------
# Fused matmul kernel:
#   out = [relu(A + pre_bias)] @ B, optionally followed by relu(out*qs + qb)
# A, B are bf16 MXU operands; accumulation is f32.
# ---------------------------------------------------------------------------
def fused_matmul(a, b, *, pre_bias=None, post=None, out_dtype=jnp.bfloat16,
                 tm_max=512, tn_max=256, tk_max=512):
    """(M,K) @ (K,N).  pre_bias (K,) bf16: relu(a + b') applied to A tiles before
    the dot (BN scale already folded into B).  post=(scale_N, bias_N): f32
    relu(acc*s+b) epilogue."""
    M, K = a.shape
    K2, N = b.shape
    assert K == K2

    Kp0, Np0, Mp0 = _round_up(K, 128), _round_up(N, 128), _round_up(M, 8)
    tk, tn, tm = min(tk_max, Kp0), min(tn_max, Np0), min(tm_max, Mp0)
    out_bytes = jnp.dtype(out_dtype).itemsize
    # Shrink tiles until the double-buffered working set fits the v7x VMEM budget.
    while _vmem_estimate(tm, tn, tk, pl.cdiv(Kp0, tk), out_bytes) > _VMEM_BUDGET:
        if tk > 128:
            tk = max(128, (tk // 2) // 128 * 128)
        elif tm > 8:
            tm = max(8, (tm // 2) // 8 * 8)
        elif tn > 128:
            tn = max(128, (tn // 2) // 128 * 128)
        else:
            break
    Kp, Np, Mp = _round_up(Kp0, tk), _round_up(Np0, tn), _round_up(Mp0, tm)
    nk = Kp // tk
    single_k = nk == 1
    # v7x has 2 TensorCores: guarantee >= 2 grid points on a "parallel" axis so
    # both get work (also enables DMA/compute overlap on single-TC chips).
    if Mp // tm == 1 and Np // tn == 1 and Mp % 16 == 0:
        tm = Mp // 2

    # Activation pad fuses with the upstream im2col gather in XLA; weight
    # pads/casts constant-fold (weights are jit closure constants).
    a_p = jnp.pad(a.astype(jnp.bfloat16), ((0, Mp - M), (0, Kp - K)))
    b_p = jnp.pad(b.astype(jnp.bfloat16), ((0, Kp - K), (0, Np - N)))

    has_pre = pre_bias is not None
    has_post = post is not None

    operands = [a_p, b_p]
    in_specs = [pl.BlockSpec((tm, tk), lambda i, j, k: (i, k)),
                pl.BlockSpec((tk, tn), lambda i, j, k: (k, j))]
    # TODO(synk): when Kp//tk >= 3, pipeline_mode=pl.Buffered(3) on the A spec
    # helps DMA-latency-bound steps; never triggers at these shapes.
    if has_pre:
        pb = jnp.pad(pre_bias.astype(jnp.bfloat16), (0, Kp - K)).reshape(1, Kp)
        operands.append(pb)
        in_specs.append(pl.BlockSpec((1, tk), lambda i, j, k: (0, k)))
    if has_post:
        qs, qb = post
        operands += [jnp.pad(qs.astype(jnp.float32), (0, Np - N)).reshape(1, Np),
                     jnp.pad(qb.astype(jnp.float32), (0, Np - N)).reshape(1, Np)]
        in_specs += [pl.BlockSpec((1, tn), lambda i, j, k: (0, j)),
                     pl.BlockSpec((1, tn), lambda i, j, k: (0, j))]

    def kernel(*refs):
        a_ref, b_ref = refs[0], refs[1]
        idx = 2
        pb_ref = qs_ref = qb_ref = None
        if has_pre:
            pb_ref = refs[idx]
            idx += 1
        if has_post:
            qs_ref, qb_ref = refs[idx], refs[idx + 1]
            idx += 2
        o_ref = refs[idx]
        acc_ref = None if single_k else refs[idx + 1]

        if has_pre:
            # Fused BN(eval)+ReLU with scale pre-folded into B: bf16 add + relu.
            # TODO(synk): when Np//tn > 1 this transform should be cached in a
            # (tm, tk) scratch under pl.when(j == 0); Np//tn == 1 here.
            a_tile = jnp.maximum(a_ref[...] + pb_ref[...], 0.0)
        else:
            a_tile = a_ref[...]
        part = jnp.dot(a_tile, b_ref[...], preferred_element_type=jnp.float32)

        def epilogue(r):
            if has_post:
                r = jnp.maximum(r * qs_ref[...] + qb_ref[...], 0.0)
            return r.astype(o_ref.dtype)

        if single_k:
            # Single k step: no accumulator scratch, no init/readback passes.
            o_ref[...] = epilogue(part)
        else:
            @pl.when(pl.program_id(2) == 0)
            def _():
                acc_ref[...] = jnp.zeros_like(acc_ref)

            acc_ref[...] += part

            @pl.when(pl.program_id(2) == pl.num_programs(2) - 1)
            def _():
                o_ref[...] = epilogue(acc_ref[...])

    out = pl.pallas_call(
        kernel,
        out_shape=jax.ShapeDtypeStruct((Mp, Np), out_dtype),
        grid_spec=pltpu.PrefetchScalarGridSpec(
            num_scalar_prefetch=0,
            grid=(Mp // tm, Np // tn, nk),
            in_specs=in_specs,
            out_specs=pl.BlockSpec((tm, tn), lambda i, j, k: (i, j)),
            scratch_shapes=([] if single_k
                            else [pltpu.VMEM((tm, tn), jnp.float32)])),
        compiler_params=pltpu.CompilerParams(
            dimension_semantics=("parallel", "parallel", "arbitrary"),
            vmem_limit_bytes=_VMEM_BUDGET),
    )(*operands)
    return out[:M, :N]


# ---------------------------------------------------------------------------
# Convolution = im2col (JAX glue) + fused Pallas matmul
# ---------------------------------------------------------------------------
def _im2col(x, kh, kw, stride, pad, pad_value=None):
    """x: (N,H,W,C) -> (N*Ho*Wo, kh*kw*C); tap-major, channel-minor column order.
    pad_value: optional per-channel (C,) border value (chosen so the fused
    in-kernel relu(col + b') maps conv zero-padding to exactly 0).
    TODO(synk): implicit im2col (per-tap grid axis over the once-padded NHWC
    input) would remove the kh*kw HBM blowup; at these tiny shapes the extra
    grid steps would cost more than the materialized columns."""
    N, H, W, C = x.shape
    if kh == 1 and kw == 1 and stride == 1 and pad == 0:
        return x.reshape(N * H * W, C), (N, H, W)
    if pad > 0:
        xp = jnp.pad(x, ((0, 0), (pad, pad), (pad, pad), (0, 0)))
        if pad_value is not None:
            interior = jnp.pad(jnp.ones((1, H, W, 1), jnp.bool_),
                               ((0, 0), (pad, pad), (pad, pad), (0, 0)))
            xp = jnp.where(interior, xp,
                           pad_value.reshape(1, 1, 1, C).astype(xp.dtype))
    else:
        xp = x
    Ho = (H + 2 * pad - kh) // stride + 1
    Wo = (W + 2 * pad - kw) // stride + 1
    patches = [xp[:, i:i + stride * Ho:stride, j:j + stride * Wo:stride, :]
               for i in range(kh) for j in range(kw)]
    cols = jnp.stack(patches, axis=3).reshape(N * Ho * Wo, kh * kw * C)
    return cols, (N, Ho, Wo)


def conv2d_fused(x, w, *, stride, pad, pre_bn=None, post_bn=None):
    """x: NHWC (bf16), w: PyTorch (Cout, Cin, kh, kw), no bias.
    pre_bn=(s,b):  computes conv(relu(bn(x)))   (BN before the conv, fused).
    post_bn=(s,b): computes relu(bn(conv(x)))   (BN after the conv, fused)."""
    Cout, Cin, kh, kw = w.shape
    w2 = jnp.transpose(w, (2, 3, 1, 0)).reshape(kh * kw * Cin, Cout)
    w2 = w2.astype(jnp.float32)
    pre_bias = None
    pad_value = None
    if pre_bn is not None:
        s, b = pre_bn
        if _concrete_all_positive(s):
            # Fold BN scale into the constant weights:
            #   relu(s*x + b) @ W == relu(x + b/s) @ (diag(s) @ W)   for s > 0.
            bprime = (b / s).astype(jnp.bfloat16)
            w2 = w2 * jnp.tile(s, kh * kw)[:, None]
            pre_bias = jnp.tile(bprime, kh * kw)
            # Border value p = -b' so relu(p + b') == 0 exactly (bf16-exact),
            # matching PyTorch's zero padding applied to relu(bn(x)).
            pad_value = -bprime
        else:
            # Rare fallback (BN scale <= 0 or non-constant): exact plain-JAX
            # BN+ReLU before the gather instead of the in-kernel fold.
            x = jnp.maximum(x.astype(jnp.float32) * s + b, 0.0).astype(jnp.bfloat16)
    cols, (N, Ho, Wo) = _im2col(x, kh, kw, stride, pad, pad_value)
    out = fused_matmul(cols, w2, pre_bias=pre_bias, post=post_bn,
                       out_dtype=jnp.bfloat16)
    return out.reshape(N, Ho, Wo, Cout)


# ---------------------------------------------------------------------------
# Head: bn2 -> relu -> global avg pool -> fc, one fused Pallas kernel,
# gridded over the batch so it stays inside VMEM at large batch/width.
# ---------------------------------------------------------------------------
def head_forward(x, bn2, fc_w, fc_b, eps=1e-5):
    N, H, W, C = x.shape
    num_classes = fc_w.shape[0]
    scale, bias = _fold_bn(bn2, eps)
    Cp = _round_up(C, 128)
    Lp = _round_up(num_classes, 128)
    bm = min(64, _round_up(N, 8))
    Nb = _round_up(N, bm)
    hw = H * W

    x2 = jnp.pad(x.reshape(N, hw, C).astype(jnp.bfloat16),
                 ((0, Nb - N), (0, 0), (0, Cp - C)))
    s_p = jnp.pad(scale, (0, Cp - C)).reshape(1, 1, Cp)
    b_p = jnp.pad(bias, (0, Cp - C)).reshape(1, 1, Cp)
    w_p = jnp.pad(fc_w.T.astype(jnp.bfloat16),
                  ((0, Cp - C), (0, Lp - num_classes)))
    fb_p = jnp.pad(fc_b.astype(jnp.float32), (0, Lp - num_classes)).reshape(1, Lp)

    def kernel(x_ref, s_ref, b_ref, w_ref, fb_ref, o_ref):
        act = jnp.maximum(
            x_ref[...].astype(jnp.float32) * s_ref[...] + b_ref[...], 0.0)
        pooled = jnp.mean(act, axis=1)                       # (bm, Cp)
        o_ref[...] = jnp.dot(pooled.astype(jnp.bfloat16), w_ref[...],
                             preferred_element_type=jnp.float32) + fb_ref[...]

    out = pl.pallas_call(
        kernel,
        out_shape=jax.ShapeDtypeStruct((Nb, Lp), jnp.float32),
        grid_spec=pltpu.PrefetchScalarGridSpec(
            num_scalar_prefetch=0,
            grid=(Nb // bm,),
            in_specs=[pl.BlockSpec((bm, hw, Cp), lambda i: (i, 0, 0)),
                      pl.BlockSpec((1, 1, Cp), lambda i: (0, 0, 0)),
                      pl.BlockSpec((1, 1, Cp), lambda i: (0, 0, 0)),
                      pl.BlockSpec((Cp, Lp), lambda i: (0, 0)),
                      pl.BlockSpec((1, Lp), lambda i: (0, 0))],
            out_specs=pl.BlockSpec((bm, Lp), lambda i: (i, 0))),
        compiler_params=pltpu.CompilerParams(
            dimension_semantics=("parallel",),
            vmem_limit_bytes=_VMEM_BUDGET),
    )(x2, s_p, b_p, w_p, fb_p)
    return out[:N, :num_classes]


# ---------------------------------------------------------------------------
# Pooling glue (plain JAX)
# ---------------------------------------------------------------------------
def maxpool_3x3_s2_p1(x):
    # TODO(synk): pooling window reductions stay in plain JAX (lax.reduce_window).
    return lax.reduce_window(x, jnp.array(-jnp.inf, x.dtype), lax.max,
                             (1, 3, 3, 1), (1, 2, 2, 1),
                             [(0, 0), (1, 1), (1, 1), (0, 0)])


def avgpool_2x2(x):
    N, H, W, C = x.shape
    Hc, Wc = H // 2, W // 2
    x = x[:, :Hc * 2, :Wc * 2, :]            # PyTorch AvgPool2d(2,2) floors odd dims
    xf = x.astype(jnp.float32).reshape(N, Hc, 2, Wc, 2, C)
    return xf.mean(axis=(2, 4)).astype(x.dtype)


# ---------------------------------------------------------------------------
# Parameter init (deterministic, mirrors the PyTorch module's __init__ shapes)
# ---------------------------------------------------------------------------
def init_params(key, num_blocks, num_layers_per_block, growth_rate,
                reduction, num_classes):
    keys = iter(jax.random.split(key, 128))

    def conv_init(shape):
        return 0.1 * jax.random.normal(next(keys), shape, jnp.float32)

    def bn_init(c):  # (gamma, beta, running_mean, running_var)
        return (jnp.ones((c,), jnp.float32), jnp.zeros((c,), jnp.float32),
                jnp.zeros((c,), jnp.float32), jnp.ones((c,), jnp.float32))

    nc = 2 * growth_rate
    params = {
        "conv1_w": conv_init((nc, 3, 7, 7)),
        "bn1": bn_init(nc),
        "blocks": [],
    }
    for i in range(num_blocks):
        layers = []
        for l in range(num_layers_per_block):
            in_c = nc + l * growth_rate
            layers.append({"bn": bn_init(in_c),
                           "conv_w": conv_init((growth_rate, in_c, 3, 3))})
        params["blocks"].append({"kind": "dense", "layers": layers})
        nc += num_layers_per_block * growth_rate
        if i != num_blocks - 1:
            out_c = int(nc * reduction)
            params["blocks"].append({"kind": "trans",
                                     "bn": bn_init(nc),
                                     "conv_w": conv_init((out_c, nc, 1, 1))})
            nc = out_c
    params["bn2"] = bn_init(nc)
    params["fc_w"] = conv_init((num_classes, nc))
    params["fc_b"] = jnp.zeros((num_classes,), jnp.float32)
    return params


# ---------------------------------------------------------------------------
# Forward pass
# ---------------------------------------------------------------------------
def densenet_forward(params, x_nchw):
    x = jnp.transpose(x_nchw, (0, 2, 3, 1)).astype(jnp.bfloat16)  # NCHW -> NHWC

    # stem: conv1 -> (bn1 -> relu fused as epilogue) -> maxpool
    x = conv2d_fused(x, params["conv1_w"], stride=2, pad=3,
                     post_bn=_fold_bn(params["bn1"]))
    x = maxpool_3x3_s2_p1(x)

    # dense blocks / transition layers (BN+ReLU fused into each conv's matmul)
    # TODO(synk): fusing a whole dense block into one pallas_call (activation
    # resident in VMEM, growth channels written in place) would remove the
    # per-layer launch + HBM concat; kept per-layer for torch.cat semantics.
    for blk in params["blocks"]:
        if blk["kind"] == "dense":
            for layer in blk["layers"]:
                h = conv2d_fused(x, layer["conv_w"], stride=1, pad=1,
                                 pre_bn=_fold_bn(layer["bn"]))
                x = jnp.concatenate([x, h], axis=-1)
        else:  # transition: bn -> relu -> 1x1 conv (fused) -> avgpool
            h = conv2d_fused(x, blk["conv_w"], stride=1, pad=0,
                             pre_bn=_fold_bn(blk["bn"]))
            x = avgpool_2x2(h)

    # head: bn2 -> relu -> global avg pool -> fc, one fused Pallas call
    return head_forward(x, params["bn2"], params["fc_w"], params["fc_b"])


if __name__ == "__main__":
    key = jax.random.PRNGKey(0)
    pkey, xkey = jax.random.split(key)

    num_blocks = 2
    num_layers_per_block = 2
    growth_rate = 4
    reduction = 0.5
    num_classes = 10

    params = init_params(pkey, num_blocks, num_layers_per_block,
                         growth_rate, reduction, num_classes)
    x = jax.random.normal(xkey, (2, 3, 16, 16), jnp.float32)   # NCHW like PyTorch

    fwd = jax.jit(lambda v: densenet_forward(params, v))       # params = constants
    out = fwd(x)
    jax.block_until_ready(out)
    assert out.shape == (2, num_classes), out.shape
    assert bool(jnp.all(jnp.isfinite(out)))
    print("KERNEL_OK")
</pallas_src>

<mosaic_0001>
module attributes {stable_mosaic.version = 11 : i64} {
  func.func @kernel(%arg0: i32, %arg1: i32, %arg2: i32, %arg3: memref<64x256xbf16, #tpu.memory_space<vmem>>, %arg4: memref<256x128xbf16, #tpu.memory_space<vmem>>, %arg5: memref<1x128xf32, #tpu.memory_space<vmem>>, %arg6: memref<1x128xf32, #tpu.memory_space<vmem>>, %arg7: memref<64x128xbf16, #tpu.memory_space<vmem>>) attributes {dimension_semantics = [#tpu.dimension_semantics<parallel>, #tpu.dimension_semantics<parallel>, #tpu.dimension_semantics<arbitrary>], iteration_bounds = array<i64: 2, 1, 1>, scalar_prefetch = 0 : i64, scratch_operands = 0 : i64, tpu.core_type = #tpu.core_type<tc>, window_params = [{transform_indices = @transform_0, window_bounds = array<i64: 64, 256>}, {transform_indices = @transform_1, window_bounds = array<i64: 256, 128>}, {transform_indices = @transform_2, window_bounds = array<i64: 1, 128>}, {transform_indices = @transform_3, window_bounds = array<i64: 1, 128>}, {transform_indices = @transform_4, window_bounds = array<i64: 64, 128>}]} {
    %c0 = arith.constant 0 : index
    %c0_0 = arith.constant 0 : index
    %0 = vector.load %arg3[%c0, %c0_0] : memref<64x256xbf16, #tpu.memory_space<vmem>>, vector<64x256xbf16>
    %c0_1 = arith.constant 0 : index
    %c0_2 = arith.constant 0 : index
    %1 = vector.load %arg4[%c0_1, %c0_2] : memref<256x128xbf16, #tpu.memory_space<vmem>>, vector<256x128xbf16>
    %cst = arith.constant dense<0.000000e+00> : vector<64x128xf32>
    %2 = tpu.matmul %0, %1, %cst {dimension_numbers = #tpu.dot_dimension_numbers<[1], [0], [0], [1], [0, 0, 1, 1], [], []>} : vector<64x256xbf16>, vector<256x128xbf16>, vector<64x128xf32> -> vector<64x128xf32>
    %c0_3 = arith.constant 0 : index
    %c0_4 = arith.constant 0 : index
    %3 = vector.load %arg5[%c0_3, %c0_4] : memref<1x128xf32, #tpu.memory_space<vmem>>, vector<1x128xf32>
    %4 = vector.broadcast %3 : vector<1x128xf32> to vector<64x128xf32>
    %5 = arith.mulf %2, %4 : vector<64x128xf32>
    %c0_5 = arith.constant 0 : index
    %c0_6 = arith.constant 0 : index
    %6 = vector.load %arg6[%c0_5, %c0_6] : memref<1x128xf32, #tpu.memory_space<vmem>>, vector<1x128xf32>
    %7 = vector.broadcast %6 : vector<1x128xf32> to vector<64x128xf32>
    %8 = arith.addf %5, %7 : vector<64x128xf32>
    %cst_7 = arith.constant 0.000000e+00 : f32
    %9 = vector.broadcast %cst_7 : f32 to vector<64x128xf32>
    %10 = arith.maximumf %8, %9 : vector<64x128xf32>
    %11 = arith.truncf %10 : vector<64x128xf32> to vector<64x128xbf16>
    %c0_8 = arith.constant 0 : index
    %c0_9 = arith.constant 0 : index
    %12 = vector.load %arg7[%c0_8, %c0_9] : memref<64x128xbf16, #tpu.memory_space<vmem>>, vector<64x128xbf16>
    tpu.vector_store %arg7[%c0_8, %c0_9], %11 {strides = array<i32>} : memref<64x128xbf16, #tpu.memory_space<vmem>>, vector<64x128xbf16>,
    return
  }
  func.func @transform_0(%arg0: i32, %arg1: i32, %arg2: i32) -> (i32, i32) {
    %c0_i32 = arith.constant 0 : i32
    return %arg0, %arg2 : i32, i32
  }
  func.func @transform_1(%arg0: i32, %arg1: i32, %arg2: i32) -> (i32, i32) {
    %c0_i32 = arith.constant 0 : i32
    return %arg2, %arg1 : i32, i32
  }
  func.func @transform_2(%arg0: i32, %arg1: i32, %arg2: i32) -> (i32, i32) {
    %c0_i32 = arith.constant 0 : i32
    %c0_i32_0 = arith.constant 0 : i32
    return %c0_i32, %arg1 : i32, i32
  }
  func.func @transform_3(%arg0: i32, %arg1: i32, %arg2: i32) -> (i32, i32) {
    %c0_i32 = arith.constant 0 : i32
    %c0_i32_0 = arith.constant 0 : i32
    return %c0_i32, %arg1 : i32, i32
  }
  func.func @transform_4(%arg0: i32, %arg1: i32, %arg2: i32) -> (i32, i32) {
    %c0_i32 = arith.constant 0 : i32
    return %arg0, %arg1 : i32, i32
  }
}

module attributes {stable_mosaic.version = 11 : i64} {
  func.func @kernel(%arg0: i32, %arg1: i32, %arg2: i32, %arg3: memref<16x128xbf16, #tpu.memory_space<vmem>>, %arg4: memref<128x128xbf16, #tpu.memory_space<vmem>>, %arg5: memref<16x128xbf16, #tpu.memory_space<vmem>>) attributes {dimension_semantics = [#tpu.dimension_semantics<parallel>, #tpu.dimension_semantics<parallel>, #tpu.dimension_semantics<arbitrary>], iteration_bounds = array<i64: 2, 1, 1>, scalar_prefetch = 0 : i64, scratch_operands = 0 : i64, tpu.core_type = #tpu.core_type<tc>, window_params = [{transform_indices = @transform_0, window_bounds = array<i64: 16, 128>}, {transform_indices = @transform_1, window_bounds = array<i64: 128, 128>}, {transform_indices = @transform_2, window_bounds = array<i64: 16, 128>}]} {
    %c0 = arith.constant 0 : index
    %c0_0 = arith.constant 0 : index
    %0 = vector.load %arg3[%c0, %c0_0] : memref<16x128xbf16, #tpu.memory_space<vmem>>, vector<16x128xbf16>
    %c0_1 = arith.constant 0 : index
    %c0_2 = arith.constant 0 : index
    %1 = vector.load %arg4[%c0_1, %c0_2] : memref<128x128xbf16, #tpu.memory_space<vmem>>, vector<128x128xbf16>
    %cst = arith.constant dense<0.000000e+00> : vector<16x128xf32>
    %2 = tpu.matmul %0, %1, %cst {dimension_numbers = #tpu.dot_dimension_numbers<[1], [0], [0], [1], [0, 0, 1, 1], [], []>} : vector<16x128xbf16>, vector<128x128xbf16>, vector<16x128xf32> -> vector<16x128xf32>
    %3 = arith.truncf %2 : vector<16x128xf32> to vector<16x128xbf16>
    %c0_3 = arith.constant 0 : index
    %c0_4 = arith.constant 0 : index
    %4 = vector.load %arg5[%c0_3, %c0_4] : memref<16x128xbf16, #tpu.memory_space<vmem>>, vector<16x128xbf16>
    tpu.vector_store %arg5[%c0_3, %c0_4], %3 {strides = array<i32>} : memref<16x128xbf16, #tpu.memory_space<vmem>>, vector<16x128xbf16>,
    return
  }
  func.func @transform_0(%arg0: i32, %arg1: i32, %arg2: i32) -> (i32, i32) {
    %c0_i32 = arith.constant 0 : i32
    return %arg0, %arg2 : i32, i32
  }
  func.func @transform_1(%arg0: i32, %arg1: i32, %arg2: i32) -> (i32, i32) {
    %c0_i32 = arith.constant 0 : i32
    return %arg2, %arg1 : i32, i32
  }
  func.func @transform_2(%arg0: i32, %arg1: i32, %arg2: i32) -> (i32, i32) {
    %c0_i32 = arith.constant 0 : i32
    return %arg0, %arg1 : i32, i32
  }
}

module attributes {stable_mosaic.version = 11 : i64} {
  func.func @kernel(%arg0: i32, %arg1: i32, %arg2: i32, %arg3: memref<8x128xbf16, #tpu.memory_space<vmem>>, %arg4: memref<128x128xbf16, #tpu.memory_space<vmem>>, %arg5: memref<8x128xbf16, #tpu.memory_space<vmem>>) attributes {dimension_semantics = [#tpu.dimension_semantics<parallel>, #tpu.dimension_semantics<parallel>, #tpu.dimension_semantics<arbitrary>], iteration_bounds = array<i64: 1, 1, 1>, scalar_prefetch = 0 : i64, scratch_operands = 0 : i64, tpu.core_type = #tpu.core_type<tc>, window_params = [{transform_indices = @transform_0, window_bounds = array<i64: 8, 128>}, {transform_indices = @transform_1, window_bounds = array<i64: 128, 128>}, {transform_indices = @transform_2, window_bounds = array<i64: 8, 128>}]} {
    %c0 = arith.constant 0 : index
    %c0_0 = arith.constant 0 : index
    %0 = vector.load %arg3[%c0, %c0_0] : memref<8x128xbf16, #tpu.memory_space<vmem>>, vector<8x128xbf16>
    %c0_1 = arith.constant 0 : index
    %c0_2 = arith.constant 0 : index
    %1 = vector.load %arg4[%c0_1, %c0_2] : memref<128x128xbf16, #tpu.memory_space<vmem>>, vector<128x128xbf16>
    %cst = arith.constant dense<0.000000e+00> : vector<8x128xf32>
    %2 = tpu.matmul %0, %1, %cst {dimension_numbers = #tpu.dot_dimension_numbers<[1], [0], [0], [1], [0, 0, 1, 1], [], []>} : vector<8x128xbf16>, vector<128x128xbf16>, vector<8x128xf32> -> vector<8x128xf32>
    %3 = arith.truncf %2 : vector<8x128xf32> to vector<8x128xbf16>
    %c0_3 = arith.constant 0 : index
    %c0_4 = arith.constant 0 : index
    %4 = vector.load %arg5[%c0_3, %c0_4] : memref<8x128xbf16, #tpu.memory_space<vmem>>, vector<8x128xbf16>
    tpu.vector_store %arg5[%c0_3, %c0_4], %3 {strides = array<i32>} : memref<8x128xbf16, #tpu.memory_space<vmem>>, vector<8x128xbf16>,
    return
  }
  func.func @transform_0(%arg0: i32, %arg1: i32, %arg2: i32) -> (i32, i32) {
    %c0_i32 = arith.constant 0 : i32
    return %arg0, %arg2 : i32, i32
  }
  func.func @transform_1(%arg0: i32, %arg1: i32, %arg2: i32) -> (i32, i32) {
    %c0_i32 = arith.constant 0 : i32
    return %arg2, %arg1 : i32, i32
  }
  func.func @transform_2(%arg0: i32, %arg1: i32, %arg2: i32) -> (i32, i32) {
    %c0_i32 = arith.constant 0 : i32
    return %arg0, %arg1 : i32, i32
  }
}

module attributes {stable_mosaic.version = 11 : i64} {
  func.func @kernel(%arg0: i32, %arg1: memref<8x4x128xbf16, #tpu.memory_space<vmem>>, %arg2: memref<1x1x128xf32, #tpu.memory_space<vmem>>, %arg3: memref<1x1x128xf32, #tpu.memory_space<vmem>>, %arg4: memref<128x128xbf16, #tpu.memory_space<vmem>>, %arg5: memref<1x128xf32, #tpu.memory_space<vmem>>, %arg6: memref<8x128xf32, #tpu.memory_space<vmem>>) attributes {dimension_semantics = [#tpu.dimension_semantics<parallel>], iteration_bounds = array<i64: 1>, scalar_prefetch = 0 : i64, scratch_operands = 0 : i64, tpu.core_type = #tpu.core_type<tc>, window_params = [{transform_indices = @transform_0, window_bounds = array<i64: 8, 4, 128>}, {pipeline_mode = #tpu.pipeline_mode<synchronous>, transform_indices = @transform_1, window_bounds = array<i64: 1, 1, 128>}, {pipeline_mode = #tpu.pipeline_mode<synchronous>, transform_indices = @transform_2, window_bounds = array<i64: 1, 1, 128>}, {pipeline_mode = #tpu.pipeline_mode<synchronous>, transform_indices = @transform_3, window_bounds = array<i64: 128, 128>}, {pipeline_mode = #tpu.pipeline_mode<synchronous>, transform_indices = @transform_4, window_bounds = array<i64: 1, 128>}, {transform_indices = @transform_5, window_bounds = array<i64: 8, 128>}]} {
    %c0 = arith.constant 0 : index
    %c0_0 = arith.constant 0 : index
    %c0_1 = arith.constant 0 : index
    %0 = vector.load %arg1[%c0, %c0_0, %c0_1] : memref<8x4x128xbf16, #tpu.memory_space<vmem>>, vector<8x4x128xbf16>
    %1 = arith.extf %0 : vector<8x4x128xbf16> to vector<8x4x128xf32>
    %c0_2 = arith.constant 0 : index
    %c0_3 = arith.constant 0 : index
    %c0_4 = arith.constant 0 : index
    %2 = vector.load %arg2[%c0_2, %c0_3, %c0_4] : memref<1x1x128xf32, #tpu.memory_space<vmem>>, vector<1x1x128xf32>
    %3 = vector.broadcast %2 : vector<1x1x128xf32> to vector<8x4x128xf32>
    %4 = arith.mulf %1, %3 : vector<8x4x128xf32>
    %c0_5 = arith.constant 0 : index
    %c0_6 = arith.constant 0 : index
    %c0_7 = arith.constant 0 : index
    %5 = vector.load %arg3[%c0_5, %c0_6, %c0_7] : memref<1x1x128xf32, #tpu.memory_space<vmem>>, vector<1x1x128xf32>
    %6 = vector.broadcast %5 : vector<1x1x128xf32> to vector<8x4x128xf32>
    %7 = arith.addf %4, %6 : vector<8x4x128xf32>
    %cst = arith.constant 0.000000e+00 : f32
    %8 = vector.broadcast %cst : f32 to vector<8x4x128xf32>
    %9 = arith.maximumf %7, %8 : vector<8x4x128xf32>
    %cst_8 = arith.constant dense<0.000000e+00> : vector<8x128xf32>
    %10 = vector.multi_reduction <add>, %9, %cst_8 [1] : vector<8x4x128xf32> to vector<8x128xf32>
    %cst_9 = arith.constant 4.000000e+00 : f32
    %11 = vector.broadcast %cst_9 : f32 to vector<8x128xf32>
    %12 = arith.divf %10, %11 : vector<8x128xf32>
    %13 = arith.truncf %12 : vector<8x128xf32> to vector<8x128xbf16>
    %c0_10 = arith.constant 0 : index
    %c0_11 = arith.constant 0 : index
    %14 = vector.load %arg4[%c0_10, %c0_11] : memref<128x128xbf16, #tpu.memory_space<vmem>>, vector<128x128xbf16>
    %cst_12 = arith.constant dense<0.000000e+00> : vector<8x128xf32>
    %15 = tpu.matmul %13, %14, %cst_12 {dimension_numbers = #tpu.dot_dimension_numbers<[1], [0], [0], [1], [0, 0, 1, 1], [], []>} : vector<8x128xbf16>, vector<128x128xbf16>, vector<8x128xf32> -> vector<8x128xf32>
    %c0_13 = arith.constant 0 : index
    %c0_14 = arith.constant 0 : index
    %16 = vector.load %arg5[%c0_13, %c0_14] : memref<1x128xf32, #tpu.memory_space<vmem>>, vector<1x128xf32>
    %17 = vector.broadcast %16 : vector<1x128xf32> to vector<8x128xf32>
    %18 = arith.addf %15, %17 : vector<8x128xf32>
    %c0_15 = arith.constant 0 : index
    %c0_16 = arith.constant 0 : index
    %19 = vector.load %arg6[%c0_15, %c0_16] : memref<8x128xf32, #tpu.memory_space<vmem>>, vector<8x128xf32>
    tpu.vector_store %arg6[%c0_15, %c0_16], %18 {strides = array<i32>} : memref<8x128xf32, #tpu.memory_space<vmem>>, vector<8x128xf32>,
    return
  }
  func.func @transform_0(%arg0: i32) -> (i32, i32, i32) {
    %c0_i32 = arith.constant 0 : i32
    %c0_i32_0 = arith.constant 0 : i32
    %c0_i32_1 = arith.constant 0 : i32
    return %arg0, %c0_i32, %c0_i32_0 : i32, i32, i32
  }
  func.func @transform_1(%arg0: i32) -> (i32, i32, i32) {
    %c0_i32 = arith.constant 0 : i32
    %c0_i32_0 = arith.constant 0 : i32
    %c0_i32_1 = arith.constant 0 : i32
    %c0_i32_2 = arith.constant 0 : i32
    return %c0_i32, %c0_i32_0, %c0_i32_1 : i32, i32, i32
  }
  func.func @transform_2(%arg0: i32) -> (i32, i32, i32) {
    %c0_i32 = arith.constant 0 : i32
    %c0_i32_0 = arith.constant 0 : i32
    %c0_i32_1 = arith.constant 0 : i32
    %c0_i32_2 = arith.constant 0 : i32
    return %c0_i32, %c0_i32_0, %c0_i32_1 : i32, i32, i32
  }
  func.func @transform_3(%arg0: i32) -> (i32, i32) {
    %c0_i32 = arith.constant 0 : i32
    %c0_i32_0 = arith.constant 0 : i32
    %c0_i32_1 = arith.constant 0 : i32
    return %c0_i32, %c0_i32_0 : i32, i32
  }
  func.func @transform_4(%arg0: i32) -> (i32, i32) {
    %c0_i32 = arith.constant 0 : i32
    %c0_i32_0 = arith.constant 0 : i32
    %c0_i32_1 = arith.constant 0 : i32
    return %c0_i32, %c0_i32_0 : i32, i32
  }
  func.func @transform_5(%arg0: i32) -> (i32, i32) {
    %c0_i32 = arith.constant 0 : i32
    %c0_i32_0 = arith.constant 0 : i32
    return %arg0, %c0_i32 : i32, i32
  }
}

</mosaic_0001>

<bundles_post_ra>
// kernel: _lambda_.7
= control target key start
LH: loop header
LB: loop body
LE: loop exit
PB: predicated region body
PF: predicated region fallthrough
CT: control target
= control target key end

     0   :  { %s992_s15 = smov 0   ;;  %s994_s16 = smov 0   ;;  %s1093_s0 = inlined_call_operand.vmem [shape: bf16[128,256], index: 0, kind: input, shape index: {}]   ;;  %s1094_s1 = inlined_call_operand.vmem [shape: bf16[256,128], index: 1, kind: input, shape index: {}]   ;;  %s1095_s2 = inlined_call_operand.vmem [shape: f32[1,128], index: 2, kind: input, shape index: {}]   ;;  %s1096_s3 = inlined_call_operand.vmem [shape: f32[1,128], index: 3, kind: input, shape index: {}]   ;;  %s1097_s4 = inlined_call_operand.vmem [shape: bf16[128,128], index: 4, kind: output, shape index: {}]  }
   0x1   :  { %s996_s17 = smov 0  }
   0x2 LB: > { %s33_s18 = sadd.s32 1, %s961_s16  ;;  %p761_p0 = scmp.ge.s32.totalorder %s965_s17, 1  ;;  %s965_s17 = sphi %s996_s17, %s14_s17   ;;  %s961_s16 = sphi %s994_s16, %s1099_s16   ;;  %s957_s15 = sphi %s992_s15, %s1098_s15  }
   0x3   : > { %p35_p1 = scmp.ge.s32.totalorder %s33_s18, 2  ;;  %p224_p2 = scmp.lt.s32.totalorder %s965_s17, 3 }
   0x5   : > { %s1101_s18 = smov (%p35_p1, %s33_s18), 0  ;;  %p225_p3 = pnand %p761_p0, %p224_p2 }
   0x6   : > { %v915_v0 = vld [vmem:[%s1094_s1 + $0x40] sm:$0xff] (!%p225_p3)   ;;  %s762_s21 = sshll.u32 (!%p225_p3), %s957_s15, 3  ;;  %v917_v2 = vld [vmem:[%s1094_s1 + $0x48] sm:$0xff] (!%p225_p3)   ;;  %v919_v4 = vld [vmem:[%s1094_s1 + $0x50] sm:$0xff] (!%p225_p3)  }
   0x7   : > { %228 = sbr.rel (%p225_p3) target bundleno = 274 (0x112), region = 36  ;;  %v916_v1 = vld [vmem:[%s1094_s1] sm:$0xff] (!%p225_p3)   ;;  %835 = vmatprep.subr.bf16.mxu0 (!%p225_p3), %v915_v0  ;;  %875 = vmatprep.subr.bf16.mxu1 (!%p225_p3), %v915_v0  ;;  %v918_v3 = vld [vmem:[%s1094_s1 + $0x8] sm:$0xff] (!%p225_p3)   ;;  %p274_p4 = scmp.lt.s32.totalorder (!%p225_p3), %s762_s21, 15  ;;  %v920_v5 = vld [vmem:[%s1094_s1 + $0x10] sm:$0xff] (!%p225_p3)  }
   0x8   : > { %836 = vmatpush3.bf16.msra.mxu0 (!%p225_p3), %v916_v1  ;;  %883 = vmatpush3.bf16.msra.mxu1 (!%p225_p3), %v916_v1  ;;  %v921_v6 = vld [vmem:[%s1094_s1 + $0x58] sm:$0xff] (!%p225_p3)   ;;  %v923_v8 = vld [vmem:[%s1094_s1 + $0x60] sm:$0xff] (!%p225_p3)   ;;  %v925_v10 = vld [vmem:[%s1094_s1 + $0x68] sm:$0xff] (!%p225_p3)  }
   0x9   : > { %837 = vmatprep.subr.bf16.mxu0 (!%p225_p3), %v917_v2  ;;  %876 = vmatprep.subr.bf16.mxu1 (!%p225_p3), %v917_v2  ;;  %v922_v7 = vld [vmem:[%s1094_s1 + $0x18] sm:$0xff] (!%p225_p3)   ;;  %v924_v9 = vld [vmem:[%s1094_s1 + $0x20] sm:$0xff] (!%p225_p3)   ;;  %v926_v13 = vld [vmem:[%s1094_s1 + $0x28] sm:$0xff] (!%p225_p3)  }
   0xa   : > { %v927_v14 = vld [vmem:[%s1094_s1 + $0x70] sm:$0xff] (!%p225_p3)   ;;  %v929_v16 = vld [vmem:[%s1094_s1 + $0x78] sm:$0xff] (!%p225_p3)   ;;  %v791_v27 = vld [vmem:[%s1095_s2] ss:$0 sm:$0xff] (!%p225_p3) }
   0xb   : > { %v928_v15 = vld [vmem:[%s1094_s1 + $0x30] sm:$0xff] (!%p225_p3)   ;;  %v930_v17 = vld [vmem:[%s1094_s1 + $0x38] sm:$0xff] (!%p225_p3)   ;;  %v792_v33 = vld [vmem:[%s1096_s3] ss:$0 sm:$0xff] (!%p225_p3) }
   0xc   : > { %838 = vmatpush3.bf16.msra.mxu0 (!%p225_p3), %v918_v3  ;;  %884 = vmatpush3.bf16.msra.mxu1 (!%p225_p3), %v918_v3 }
   0xd   : > { %839 = vmatprep.subr.bf16.mxu0 (!%p225_p3), %v919_v4  ;;  %877 = vmatprep.subr.bf16.mxu1 (!%p225_p3), %v919_v4 }
   0xe   : > { %s1103_s21 = smov (!%p274_p4, %s762_s21), 15 }
   0xf   : > { %s803_s10 = sshll.u32 %s1103_s21, 3  ;;  %s766_s12 = sshll.u32 %s1103_s21, 2 }
  0x10   : > { %840 = vmatpush3.bf16.msra.mxu0 %v920_v5  ;;  %885 = vmatpush3.bf16.msra.mxu1 %v920_v5  ;;  %s1043_s15 = scalar_lea.vmem %s1093_s0, %s803_s10 }
  0x11   : > { %841 = vmatprep.subr.bf16.mxu0 %v921_v6  ;;  %878 = vmatprep.subr.bf16.mxu1 %v921_v6  ;;  %v933_v11 = vld [vmem:[%s1043_s15 + $0x4] ss:$8 sps:$4 sm:$0xff]   ;;  %v931_v18 = vld [vmem:[%s1043_s15] ss:$8 sps:$4 sm:$0xff]   ;;  %v937_v20 = vld [vmem:[%s1043_s15 + $0x14] ss:$8 sps:$4 sm:$0xff]  }
  0x12   : > { %v936_v12 = vld [vmem:[%s1043_s15 + $0x24] ss:$8 sps:$4 sm:$0xff]   ;;  %517 = vmatprep.mubr.bf16.mxu0 %v933_v11  ;;  %v934_v19 = vld [vmem:[%s1043_s15 + $0x20] ss:$8 sps:$4 sm:$0xff]   ;;  %v939_v21 = vld [vmem:[%s1043_s15 + $0x34] ss:$8 sps:$4 sm:$0xff]  }
  0x13   : > { %533 = vmatprep.mubr.bf16.mxu1 %v936_v12  ;;  %v941_v22 = vld [vmem:[%s1043_s15 + $0x10] ss:$8 sps:$4 sm:$0xff]  }
  0x14   : > { %842 = vmatpush3.bf16.msra.mxu0 %v922_v7  ;;  %886 = vmatpush3.bf16.msra.mxu1 %v922_v7  ;;  %v942_v23 = vld [vmem:[%s1043_s15 + $0x30] ss:$8 sps:$4 sm:$0xff]   ;;  %s306_s15 = scalar_lea.vmem %s1097_s4, %s766_s12 }
  0x15   : > { %843 = vmatprep.subr.bf16.mxu0 %v923_v8  ;;  %879 = vmatprep.subr.bf16.mxu1 %v923_v8 }
  0x18   : > { %844 = vmatpush3.bf16.msra.mxu0 %v924_v9  ;;  %887 = vmatpush3.bf16.msra.mxu1 %v924_v9 }
  0x19   : > { %845 = vmatprep.subr.bf16.mxu0 %v925_v10  ;;  %880 = vmatprep.subr.bf16.mxu1 %v925_v10 }
  0x1c   : > { %846 = vmatpush3.bf16.msra.mxu0 %v926_v13  ;;  %888 = vmatpush3.bf16.msra.mxu1 %v926_v13 }
  0x1d   : > { %847 = vmatprep.subr.bf16.mxu0 %v927_v14  ;;  %881 = vmatprep.subr.bf16.mxu1 %v927_v14 }
  0x20   : > { %848 = vmatpush3.bf16.msra.mxu0 %v928_v15  ;;  %889 = vmatpush3.bf16.msra.mxu1 %v928_v15 }
  0x21   : > { %849 = vmatprep.subr.bf16.mxu0 %v929_v16  ;;  %882 = vmatprep.subr.bf16.mxu1 %v929_v16 }
  0x24   : > { %850 = vmatpush3.bf16.msra.mxu0 %v930_v17  ;;  %890 = vmatpush3.bf16.msra.mxu1 %v930_v17 }
  0x27   : > { %518 = vmatmul.mubr.bf16.vlgmr.msra.gmra.mrb[0].mxu0 %v931_v18  ;;  %534 = vmatmul.mubr.bf16.vlgmr.msra.gmra.mrb[0].mxu1 %v934_v19 }
  0x28   : > { %525 = vmatprep.mubr.bf16.mxu0 %v937_v20  ;;  %541 = vmatprep.mubr.bf16.mxu1 %v939_v21 }
  0x2f   : > { %526 = vmatmul.mubr.bf16.gmra.mrb[4].mxu0 %v941_v22  ;;  %542 = vmatmul.mubr.bf16.gmra.mrb[4].mxu1 %v942_v23 }
  0xfa   : > { %v851_v24 = vpop.f32.mrb[0].mxu0  ;;  %v863_v25 = vpop.f32.mrb[0].mxu1 }
  0xfb   : > { %v852_v26 = vpop.f32.mrb[1].mxu0  ;;  %v864_v28 = vpop.f32.mrb[1].mxu1 }
  0xfc   : > { %v853_v29 = vadd.f32 %v852_v26, %v851_v24  ;;  %v865_v30 = vadd.f32 %v864_v28, %v863_v25  ;;  %v854_v31 = vpop.f32.mrb[2].mxu0  ;;  %v866_v32 = vpop.f32.mrb[2].mxu1 }
  0xfd   : > { %v855_v34 = vpop.f32.mrb[3].mxu0  ;;  %v867_v35 = vpop.f32.mrb[3].mxu1 }
  0xfe   : > { %v557_v36 = vmul.f32 %v853_v29, %v791_v27  ;;  %v561_v37 = vmul.f32 %v865_v30, %v791_v27  ;;  %v856_v38 = vadd.f32 %v855_v34, %v854_v31  ;;  %v868_v39 = vadd.f32 %v867_v35, %v866_v32 }
 0x100   : > { %v572_v40 = vadd.f32 %v792_v33, %v557_v36  ;;  %v576_v41 = vadd.f32 %v792_v33, %v561_v37  ;;  %v558_v42 = vmul.f32 %v856_v38, %v791_v27  ;;  %v562_v43 = vmul.f32 %v868_v39, %v791_v27 }
 0x102   : > { %v573_v44 = vadd.f32 %v792_v33, %v558_v42  ;;  %v577_v45 = vadd.f32 %v792_v33, %v562_v43  ;;  %v857_v46 = vpop.f32.mrb[4].mxu0  ;;  %v869_v47 = vpop.f32.mrb[4].mxu1  ;;  %v580_v48 = vmax.f32 %v572_v40, 0.0  ;;  %v584_v49 = vmax.f32 %v576_v41, 0.0 }
 0x103   : > { %v858_v50 = vpop.f32.mrb[5].mxu0  ;;  %v870_v51 = vpop.f32.mrb[5].mxu1 }
 0x104   : > { %v581_v52 = vmax.f32 %v573_v44, 0.0  ;;  %v585_v53 = vmax.f32 %v577_v45, 0.0  ;;  %v859_v54 = vadd.f32 %v858_v50, %v857_v46  ;;  %v871_v55 = vadd.f32 %v870_v51, %v869_v47  ;;  %v860_v56 = vpop.f32.mrb[6].mxu0  ;;  %v872_v57 = vpop.f32.mrb[6].mxu1 }
 0x105   : > { %v861_v58 = vpop.f32.mrb[7].mxu0  ;;  %v873_v59 = vpop.f32.mrb[7].mxu1 }
 0x106   : > { %v815_v60 = vpack.c.bf16 %v581_v52, %v580_v48  ;;  %v825_v61 = vpack.c.bf16 %v585_v53, %v584_v49  ;;  %v559_v62 = vmul.f32 %v859_v54, %v791_v27  ;;  %v563_v63 = vmul.f32 %v871_v55, %v791_v27 }
 0x107   : > { %v862_v0 = vadd.f32 %v861_v58, %v860_v56  ;;  %v874_v1 = vadd.f32 %v873_v59, %v872_v57 }
 0x108   : > { %816 = vst [vmem:[%s306_s15] sm:$0xff] %v815_v60   ;;  %833 = vst [vmem:[%s306_s15 + $0x10] sm:$0xff] %v825_v61   ;;  %v574_v2 = vadd.f32 %v792_v33, %v559_v62  ;;  %v578_v3 = vadd.f32 %v792_v33, %v563_v63 }
 0x109   : > { %v560_v4 = vmul.f32 %v862_v0, %v791_v27  ;;  %v564_v5 = vmul.f32 %v874_v1, %v791_v27 }
 0x10a   : > { %v582_v8 = vmax.f32 %v574_v2, 0.0  ;;  %v586_v9 = vmax.f32 %v578_v3, 0.0 }
 0x10b   : > { %v575_v6 = vadd.f32 %v792_v33, %v560_v4  ;;  %v579_v7 = vadd.f32 %v792_v33, %v564_v5 }
 0x10d   : > { %v583_v10 = vmax.f32 %v575_v6, 0.0  ;;  %v587_v11 = vmax.f32 %v579_v7, 0.0 }
 0x10f   : > { %v820_v12 = vpack.c.bf16 %v583_v10, %v582_v8  ;;  %v830_v13 = vpack.c.bf16 %v587_v11, %v586_v9 }
 0x111   : > { %832 = vst [vmem:[%s306_s15 + $0x8] sm:$0xff] %v820_v12   ;;  %834 = vst [vmem:[%s306_s15 + $0x18] sm:$0xff] %v830_v13  }
 0x112 PF: > { %s14_s17 = sadd.s32 1, %s965_s17   ;;  %s1098_s15 = smov %s961_s16 }
 0x113   : > { %p11_p5 = scmp.ge.s32.totalorder %s14_s17, 4   ;;  %s1099_s16 = smov %s1101_s18 }
 0x115   :  { %13 = sbr.rel (!%p11_p5) target bundleno = 2 (0x2), region = 75 }

// kernel: _lambda_.8
= control target key start
LH: loop header
LB: loop body
LE: loop exit
PB: predicated region body
PF: predicated region fallthrough
CT: control target
= control target key end

     0   :  { %s576_s9 = smov 0   ;;  %s578_s10 = smov 0   ;;  %s633_s0 = inlined_call_operand.vmem [shape: bf16[32,128], index: 0, kind: input, shape index: {}]   ;;  %s634_s1 = inlined_call_operand.vmem [shape: bf16[128,128], index: 1, kind: input, shape index: {}]   ;;  %s635_s2 = inlined_call_operand.vmem [shape: bf16[32,128], index: 2, kind: output, shape index: {}]  }
   0x1   :  { %s580_s11 = smov 0  }
   0x2 LB: > { %s31_s12 = sadd.s32 1, %s553_s10  ;;  %p446_p0 = scmp.ge.s32.totalorder %s557_s11, 1  ;;  %s557_s11 = sphi %s580_s11, %s12_s11   ;;  %s553_s10 = sphi %s578_s10, %s637_s10   ;;  %s549_s9 = sphi %s576_s9, %s636_s9  }
   0x3   : > { %p33_p1 = scmp.ge.s32.totalorder %s31_s12, 2  ;;  %p155_p2 = scmp.lt.s32.totalorder %s557_s11, 3 }
   0x5   : > { %s639_s12 = smov (%p33_p1, %s31_s12), 0  ;;  %p156_p3 = pnand %p446_p0, %p155_p2 }
   0x6   : > { %v526_v0 = vld [vmem:[%s634_s1] sm:$0xff] (!%p156_p3)   ;;  %v559_v1 = vmov (!%p156_p3), 0.0   ;;  %v527_v2 = vld [vmem:[%s634_s1 + $0x8] sm:$0xff] (!%p156_p3)   ;;  %vm560_vm0 = vmmov (!%p156_p3), 0   ;;  %s447_s17 = sshll.u32 (!%p156_p3), %s549_s9, 1  ;;  %v528_v3 = vld [vmem:[%s634_s1 + $0x10] sm:$0xff] (!%p156_p3)  }
   0x7   : > { %159 = sbr.rel (%p156_p3) target bundleno = 256 (0x100), region = 28  ;;  %480 = vmatprep.subr.bf16.mxu0 (!%p156_p3), %v559_v1  ;;  %496 = vmatprep.mubr.msk.bf16.mxu0 (!%p156_p3), %vm560_vm0, %v559_v1  ;;  %p192_p4 = scmp.lt.s32.totalorder (!%p156_p3), %s447_s17, 3  ;;  %v529_v4 = vld [vmem:[%s634_s1 + $0x18] sm:$0xff] (!%p156_p3)   ;;  %v530_v5 = vld [vmem:[%s634_s1 + $0x20] sm:$0xff] (!%p156_p3)   ;;  %v531_v6 = vld [vmem:[%s634_s1 + $0x28] sm:$0xff] (!%p156_p3)  }
   0x8   : > { %481 = vmatpush3.bf16.msra.mxu0 (!%p156_p3), %v526_v0  ;;  %v532_v7 = vld [vmem:[%s634_s1 + $0x30] sm:$0xff] (!%p156_p3)   ;;  %v533_v8 = vld [vmem:[%s634_s1 + $0x38] sm:$0xff] (!%p156_p3)  }
   0x9   : > { %482 = vmatprep.subr.bf16.mxu0 (!%p156_p3), %v559_v1 }
   0xc   : > { %483 = vmatpush3.bf16.msra.mxu0 (!%p156_p3), %v527_v2 }
   0xd   : > { %484 = vmatprep.subr.bf16.mxu0 (!%p156_p3), %v559_v1 }
   0xe   : > { %s641_s17 = smov (!%p192_p4, %s447_s17), 3 }
   0xf   : > { %s448_s20 = sshll.u32 %s641_s17, 2 }
  0x10   : > { %s198_s23 = scalar_lea.vmem %s633_s0, %s448_s20  ;;  %485 = vmatpush3.bf16.msra.mxu0 %v528_v3  ;;  %s216_s8 = scalar_lea.vmem %s635_s2, %s448_s20 }
  0x11   : > { %486 = vmatprep.subr.bf16.mxu0 %v559_v1  ;;  %v534_v9 = vld [vmem:[%s198_s23] sm:$0xff]  }
  0x14   : > { %487 = vmatpush3.bf16.msra.mxu0 %v529_v4 }
  0x15   : > { %488 = vmatprep.subr.bf16.mxu0 %v559_v1 }
  0x18   : > { %489 = vmatpush3.bf16.msra.mxu0 %v530_v5 }
  0x19   : > { %490 = vmatprep.subr.bf16.mxu0 %v559_v1 }
  0x1c   : > { %491 = vmatpush3.bf16.msra.mxu0 %v531_v6 }
  0x1d   : > { %492 = vmatprep.subr.bf16.mxu0 %v559_v1 }
  0x20   : > { %493 = vmatpush3.bf16.msra.mxu0 %v532_v7 }
  0x21   : > { %494 = vmatprep.subr.bf16.mxu0 %v559_v1 }
  0x24   : > { %495 = vmatpush3.bf16.msra.mxu0 %v533_v8 }
  0x27   : > { %497 = vmatmul.mubr.bf16.vlgmr.msra.gmra.mrb[0].mxu0 %v534_v9 }
  0xfa   : > { %v325_v10 = vpop.f32.mrb[0].mxu0 }
  0xfb   : > { %v498_v11 = vpop.f32.mrb[1].mxu0 }
  0xfc   : > { %v328_v12 = vpop.f32.mrb[2].mxu0 }
  0xfd   : > { %v469_v13 = vpack.c.bf16 %v328_v12, %v325_v10  ;;  %v499_v14 = vpop.f32.mrb[3].mxu0 }
  0xff   : > { %470 = vst [vmem:[%s216_s8] sm:$0xff] %v469_v13  }
 0x100 PF: > { %s12_s11 = sadd.s32 1, %s557_s11   ;;  %s636_s9 = smov %s553_s10 }
 0x101   : > { %p9_p5 = scmp.ge.s32.totalorder %s12_s11, 4   ;;  %s637_s10 = smov %s639_s12 }
 0x103   :  { %11 = sbr.rel (!%p9_p5) target bundleno = 2 (0x2), region = 61 }

// kernel: _lambda_.11
= control target key start
LH: loop header
LB: loop body
LE: loop exit
PB: predicated region body
PF: predicated region fallthrough
CT: control target
= control target key end

     0   :  { %v170_v0 = vmov 0.0   ;;  %vm171_vm0 = vmmov 0   ;;  %s217_s1 = inlined_call_operand.vmem [shape: bf16[128,128], index: 1, kind: input, shape index: {}]   ;;  %s218_s0 = inlined_call_operand.vmem [shape: bf16[8,128], index: 0, kind: input, shape index: {}]   ;;  %s219_s2 = inlined_call_operand.vmem [shape: bf16[8,128], index: 2, kind: output, shape index: {}]  }
   0x1   :  { %140 = vmatprep.subr.bf16.mxu0 %v170_v0  ;;  %v162_v1 = vld [vmem:[%s217_s1] sm:$0xff]   ;;  %156 = vmatprep.mubr.msk.bf16.mxu0 %vm171_vm0, %v170_v0  ;;  %v163_v2 = vld [vmem:[%s217_s1 + $0x8] sm:$0xff]   ;;  %v164_v3 = vld [vmem:[%s217_s1 + $0x10] sm:$0xff]  }
   0x2   :  { %141 = vmatpush3.bf16.msra.mxu0 %v162_v1  ;;  %v165_v4 = vld [vmem:[%s217_s1 + $0x18] sm:$0xff]   ;;  %v166_v5 = vld [vmem:[%s217_s1 + $0x20] sm:$0xff]   ;;  %v167_v6 = vld [vmem:[%s217_s1 + $0x28] sm:$0xff]  }
   0x3   :  { %142 = vmatprep.subr.bf16.mxu0 %v170_v0  ;;  %v168_v7 = vld [vmem:[%s217_s1 + $0x30] sm:$0xff]   ;;  %v169_v8 = vld [vmem:[%s217_s1 + $0x38] sm:$0xff]   ;;  %v12_v9 = vld [vmem:[%s218_s0] sm:$0xf] }
   0x6   :  { %143 = vmatpush3.bf16.msra.mxu0 %v163_v2 }
   0x7   :  { %144 = vmatprep.subr.bf16.mxu0 %v170_v0 }
   0xa   :  { %145 = vmatpush3.bf16.msra.mxu0 %v164_v3 }
   0xb   :  { %146 = vmatprep.subr.bf16.mxu0 %v170_v0 }
   0xe   :  { %147 = vmatpush3.bf16.msra.mxu0 %v165_v4 }
   0xf   :  { %148 = vmatprep.subr.bf16.mxu0 %v170_v0 }
  0x12   :  { %149 = vmatpush3.bf16.msra.mxu0 %v166_v5 }
  0x13   :  { %150 = vmatprep.subr.bf16.mxu0 %v170_v0 }
  0x16   :  { %151 = vmatpush3.bf16.msra.mxu0 %v167_v6 }
  0x17   :  { %152 = vmatprep.subr.bf16.mxu0 %v170_v0 }
  0x1a   :  { %153 = vmatpush3.bf16.msra.mxu0 %v168_v7 }
  0x1b   :  { %154 = vmatprep.subr.bf16.mxu0 %v170_v0 }
  0x1e   :  { %155 = vmatpush3.bf16.msra.mxu0 %v169_v8 }
  0x21   :  { %157 = vmatmul.mubr.bf16.vlgmr.msra.gmra.mrb[0].mxu0 %v12_v9 }
  0xf4   :  { %v111_v10 = vpop.f32.mrb[0].mxu0 }
  0xf5   :  { %v117_v11 = vpack.c.bf16 %v111_v10, %v111_v10  ;;  %v158_v12 = vpop.f32.mrb[1].mxu0 }
  0xf6   :  { %v114_v13 = vpop.f32.mrb[2].mxu0 }
  0xf7   :  { %118 = vst [vmem:[%s219_s2] sm:$0xf] %v117_v11  ;;  %v159_v14 = vpop.f32.mrb[3].mxu0 }

// kernel: _lambda_.13
= control target key start
LH: loop header
LB: loop body
LE: loop exit
PB: predicated region body
PF: predicated region fallthrough
CT: control target
= control target key end

     0   :  { %v347_v0 = vmov 0.0   ;;  %vm348_vm0 = vmmov 0   ;;  %vm75_vm1 = vcmask 1043456   ;;  %vm188_vm2 = vcmask 1041409   ;;  %s459_s3 = inlined_call_operand.vmem [shape: bf16[128,128], index: 3, kind: input, shape index: {}]   ;;  %s460_s0 = inlined_call_operand.vmem [shape: bf16[8,4,128], index: 0, kind: input, shape index: {}]   ;;  %s461_s1 = inlined_call_operand.vmem [shape: f32[1,1,128], index: 1, kind: input, shape index: {}]   ;;  %s462_s2 = inlined_call_operand.vmem [shape: f32[1,1,128], index: 2, kind: input, shape index: {}]   ;;  %s463_s4 = inlined_call_operand.vmem [shape: f32[1,128], index: 4, kind: input, shape index: {}]   ;;  %s464_s5 = inlined_call_operand.vmem [shape: f32[8,128], index: 5, kind: output, shape index: {}]  }
   0x1   :  { %317 = vmatprep.subr.bf16.mxu0 %v347_v0  ;;  %v339_v1 = vld [vmem:[%s459_s3] sm:$0xff]   ;;  %333 = vmatprep.mubr.msk.bf16.mxu0 %vm348_vm0, %v347_v0  ;;  %v340_v2 = vld [vmem:[%s459_s3 + $0x8] sm:$0xff]   ;;  %v341_v3 = vld [vmem:[%s459_s3 + $0x10] sm:$0xff]   ;;  %vm190_vm3 = vcmask 1042434   ;;  %vm192_vm4 = vcmask 1043459   ;;  %vm194_vm5 = vcmask 1044484  }
   0x2   :  { %318 = vmatpush3.bf16.msra.mxu0 %v339_v1  ;;  %v342_v4 = vld [vmem:[%s459_s3 + $0x18] sm:$0xff]   ;;  %v21_v5 = vld [vmem:[%s460_s0] sm:$0x3]  ;;  %v22_v6 = vld [vmem:[%s460_s0 + $0x2] sm:$0x3]  ;;  %vm196_vm6 = vcmask 1045509  }
   0x3   :  { %319 = vmatprep.subr.bf16.mxu0 %v347_v0  ;;  %v23_v7 = vld [vmem:[%s460_s0 + $0x4] sm:$0x3]  ;;  %v24_v8 = vld [vmem:[%s460_s0 + $0x6] sm:$0x3]  ;;  %v25_v9 = vld [vmem:[%s460_s0 + $0x8] sm:$0x3]  ;;  %v29_v11 = vunpack.c.l.bf16 %v21_v5  ;;  %v30_v12 = vunpack.c.l.bf16 %v22_v6 }
   0x4   :  { %v26_v10 = vld [vmem:[%s460_s0 + $0xa] sm:$0x3]  ;;  %v31_v13 = vunpack.c.l.bf16 %v23_v7  ;;  %v27_v14 = vld [vmem:[%s460_s0 + $0xc] sm:$0x3]  ;;  %v28_v15 = vld [vmem:[%s460_s0 + $0xe] sm:$0x3]  ;;  %v32_v16 = vunpack.c.l.bf16 %v24_v8  ;;  %v33_v17 = vunpack.c.l.bf16 %v25_v9 }
   0x5   :  { %v34_v18 = vunpack.c.l.bf16 %v26_v10  ;;  %v297_v19 = vld [vmem:[%s461_s1] ss:$0 sm:$0xff]  ;;  %v35_v20 = vunpack.c.l.bf16 %v27_v14  ;;  %v36_v21 = vunpack.c.l.bf16 %v28_v15  ;;  %v344_v50 = vld [vmem:[%s459_s3 + $0x28] sm:$0xff]   ;;  %vm198_vm7 = vcmask 1046534  }
   0x6   :  { %320 = vmatpush3.bf16.msra.mxu0 %v340_v2  ;;  %v44_v22 = vmul.f32 %v297_v19, %v29_v11  ;;  %v45_v23 = vmul.f32 %v297_v19, %v30_v12  ;;  %v298_v24 = vld [vmem:[%s462_s2] ss:$0 sm:$0xff]  ;;  %v46_v25 = vmul.f32 %v297_v19, %v31_v13  ;;  %v47_v26 = vmul.f32 %v297_v19, %v32_v16 }
   0x7   :  { %321 = vmatprep.subr.bf16.mxu0 %v347_v0  ;;  %v48_v27 = vmul.f32 %v297_v19, %v33_v17  ;;  %v49_v28 = vmul.f32 %v297_v19, %v34_v18  ;;  %v50_v29 = vmul.f32 %v297_v19, %v35_v20  ;;  %v51_v30 = vmul.f32 %v297_v19, %v36_v21  ;;  %v343_v33 = vld [vmem:[%s459_s3 + $0x20] sm:$0xff]   ;;  %v346_v21 = vld [vmem:[%s459_s3 + $0x38] sm:$0xff]  }
   0x8   :  { %v59_v31 = vadd.f32 %v298_v24, %v44_v22  ;;  %v60_v32 = vadd.f32 %v298_v24, %v45_v23  ;;  %v61_v34 = vadd.f32 %v298_v24, %v46_v25  ;;  %v62_v35 = vadd.f32 %v298_v24, %v47_v26 }
   0x9   :  { %v63_v36 = vadd.f32 %v298_v24, %v48_v27  ;;  %v64_v37 = vadd.f32 %v298_v24, %v49_v28  ;;  %v65_v38 = vadd.f32 %v298_v24, %v50_v29  ;;  %v66_v39 = vadd.f32 %v298_v24, %v51_v30 }
   0xa   :  { %322 = vmatpush3.bf16.msra.mxu0 %v341_v3  ;;  %v67_v40 = vmax.f32 %v59_v31, 0.0  ;;  %v68_v41 = vmax.f32 %v60_v32, 0.0  ;;  %v69_v42 = vmax.f32 %v61_v34, 0.0  ;;  %v70_v43 = vmax.f32 %v62_v35, 0.0 }
   0xb   :  { %323 = vmatprep.subr.bf16.mxu0 %v347_v0  ;;  %v71_v44 = vmax.f32 %v63_v36, 0.0  ;;  %v72_v45 = vmax.f32 %v64_v37, 0.0  ;;  %v73_v46 = vmax.f32 %v65_v38, 0.0  ;;  %v74_v47 = vmax.f32 %v66_v39, 0.0 }
   0xc   :  { %v76_v48 = vsel %vm75_vm1, %v67_v40, 0.0  ;;  %v83_v49 = vsel %vm75_vm1, %v68_v41, 0.0  ;;  %v90_v53 = vsel %vm75_vm1, %v69_v42, 0.0  ;;  %v97_v54 = vsel %vm75_vm1, %v70_v43, 0.0 }
   0xd   :  { %v77_v51 = vrot.slane %v76_v48, 4  ;;  %v84_v52 = vrot.slane %v83_v49, 4  ;;  %v91_v55 = vrot.slane %v90_v53, 4  ;;  %v98_v56 = vrot.slane %v97_v54, 4 }
   0xe   :  { %324 = vmatpush3.bf16.msra.mxu0 %v342_v4  ;;  %v104_v57 = vsel %vm75_vm1, %v71_v44, 0.0  ;;  %v111_v58 = vsel %vm75_vm1, %v72_v45, 0.0  ;;  %v118_v2 = vsel %vm75_vm1, %v73_v46, 0.0  ;;  %v125_v3 = vsel %vm75_vm1, %v74_v47, 0.0  ;;  %v345_v4 = vld [vmem:[%s459_s3 + $0x30] sm:$0xff]  }
   0xf   :  { %325 = vmatprep.subr.bf16.mxu0 %v347_v0  ;;  %v78_v59 = vadd.f32 %v77_v51, %v76_v48  ;;  %v85_v60 = vadd.f32 %v84_v52, %v83_v49  ;;  %v105_v61 = vrot.slane %v104_v57, 4  ;;  %v112_v62 = vrot.slane %v111_v58, 4 }
  0x10   :  { %v92_v63 = vadd.f32 %v91_v55, %v90_v53  ;;  %v99_v1 = vadd.f32 %v98_v56, %v97_v54  ;;  %v119_v11 = vrot.slane %v118_v2, 4  ;;  %v126_v12 = vrot.slane %v125_v3, 4 }
  0x11   :  { %v79_v5 = vrot.slane %v78_v59, 2  ;;  %v86_v6 = vrot.slane %v85_v60, 2  ;;  %v106_v7 = vadd.f32 %v105_v61, %v104_v57  ;;  %v113_v8 = vadd.f32 %v112_v62, %v111_v58 }
  0x12   :  { %326 = vmatpush3.bf16.msra.mxu0 %v343_v33  ;;  %v93_v9 = vrot.slane %v92_v63, 2  ;;  %v100_v10 = vrot.slane %v99_v1, 2  ;;  %v120_v19 = vadd.f32 %v119_v11, %v118_v2  ;;  %v127_v20 = vadd.f32 %v126_v12, %v125_v3  ;;  %v299_v12 = vld [vmem:[%s463_s4] ss:$0 sm:$0xff] }
  0x13   :  { %327 = vmatprep.subr.bf16.mxu0 %v347_v0  ;;  %v80_v13 = vadd.f32 %v79_v5, %v78_v59  ;;  %v87_v14 = vadd.f32 %v86_v6, %v85_v60  ;;  %v107_v15 = vrot.slane %v106_v7, 2  ;;  %v114_v16 = vrot.slane %v113_v8, 2 }
  0x14   :  { %v94_v17 = vadd.f32 %v93_v9, %v92_v63  ;;  %v101_v18 = vadd.f32 %v100_v10, %v99_v1  ;;  %v121_v28 = vrot.slane %v120_v19, 2  ;;  %v128_v29 = vrot.slane %v127_v20, 2 }
  0x15   :  { %v81_v22 = vrot.slane %v80_v13, 1  ;;  %v88_v23 = vrot.slane %v87_v14, 1  ;;  %v108_v24 = vadd.f32 %v107_v15, %v106_v7  ;;  %v115_v25 = vadd.f32 %v114_v16, %v113_v8 }
  0x16   :  { %328 = vmatpush3.bf16.msra.mxu0 %v344_v50  ;;  %v95_v26 = vrot.slane %v94_v17, 1  ;;  %v102_v27 = vrot.slane %v101_v18, 1  ;;  %v122_v36 = vadd.f32 %v121_v28, %v120_v19  ;;  %v129_v37 = vadd.f32 %v128_v29, %v127_v20 }
  0x17   :  { %329 = vmatprep.subr.bf16.mxu0 %v347_v0  ;;  %v82_v30 = vadd.f32 %v81_v22, %v80_v13  ;;  %v89_v31 = vadd.f32 %v88_v23, %v87_v14  ;;  %v109_v32 = vrot.slane %v108_v24, 1  ;;  %v116_v33 = vrot.slane %v115_v25, 1 }
  0x18   :  { %v96_v34 = vadd.f32 %v95_v26, %v94_v17  ;;  %v103_v35 = vadd.f32 %v102_v27, %v101_v18  ;;  %v123_v42 = vrot.slane %v122_v36, 1  ;;  %vm200_vm8 = vcmask 1047559  }
  0x19   :  { %v110_v38 = vadd.f32 %v109_v32, %v108_v24  ;;  %v117_v39 = vadd.f32 %v116_v33, %v115_v25  ;;  %v133_v40 = vmul.f32 0.25, %v82_v30  ;;  %v134_v41 = vmul.f32 0.25, %v89_v31 }
  0x1a   :  { %330 = vmatpush3.bf16.msra.mxu0 %v345_v4  ;;  %v135_v43 = vmul.f32 0.25, %v96_v34  ;;  %v136_v44 = vmul.f32 0.25, %v103_v35  ;;  %v124_v49 = vadd.f32 %v123_v42, %v122_v36 }
  0x1b   :  { %331 = vmatprep.subr.bf16.mxu0 %v347_v0  ;;  %v130_v0 = vrot.slane %v129_v37, 1  ;;  %v137_v45 = vmul.f32 0.25, %v110_v38  ;;  %v138_v46 = vmul.f32 0.25, %v117_v39  ;;  %v141_v47 = vpack.c.bf16 %v133_v40, %v133_v40 }
  0x1c   :  { %v142_v48 = vpack.c.bf16 %v134_v41, %v134_v41  ;;  %v143_v51 = vpack.c.bf16 %v135_v43, %v135_v43  ;;  %v144_v52 = vpack.c.bf16 %v136_v44, %v136_v44  ;;  %v139_v57 = vmul.f32 0.25, %v124_v49 }
  0x1d   :  { %v131_v50 = vadd.f32 %v130_v0, %v129_v37  ;;  %v145_v53 = vpack.c.bf16 %v137_v45, %v137_v45  ;;  %v146_v54 = vpack.c.bf16 %v138_v46, %v138_v46  ;;  %v180_v55 = vunpack.c.l.b16 %v141_v47 }
  0x1e   :  { %332 = vmatpush3.bf16.msra.mxu0 %v346_v21  ;;  %v181_v56 = vunpack.c.l.b16 %v142_v48  ;;  %v182_v59 = vunpack.c.l.b16 %v143_v51  ;;  %v183_v60 = vunpack.c.l.b16 %v144_v52  ;;  %v147_v1 = vpack.c.bf16 %v139_v57, %v139_v57 }
  0x1f   :  { %v140_v58 = vmul.f32 0.25, %v131_v50  ;;  %v184_v61 = vunpack.c.l.b16 %v145_v53  ;;  %v185_v62 = vunpack.c.l.b16 %v146_v54 }
  0x20   :  { %v189_v63 = vsel %vm188_vm2, %v181_v56, %v180_v55  ;;  %v186_v5 = vunpack.c.l.b16 %v147_v1 }
  0x21   :  { %v148_v2 = vpack.c.bf16 %v140_v58, %v140_v58  ;;  %v191_v3 = vsel %vm190_vm3, %v182_v59, %v189_v63 }
  0x22   :  { %v193_v4 = vsel %vm192_vm4, %v183_v60, %v191_v3 }
  0x23   :  { %v187_v6 = vunpack.c.l.b16 %v148_v2  ;;  %v195_v7 = vsel %vm194_vm5, %v184_v61, %v193_v4 }
  0x24   :  { %v197_v8 = vsel %vm196_vm6, %v185_v62, %v195_v7 }
  0x25   :  { %v199_v9 = vsel %vm198_vm7, %v186_v5, %v197_v8 }
  0x26   :  { %v201_v10 = vsel %vm200_vm8, %v187_v6, %v199_v9 }
  0x27   :  { %v202_v11 = vpack.c.b16 %v201_v10, %v201_v10 }
  0x29   :  { %334 = vmatmul.mubr.bf16.vlgmr.msra.gmra.mrb[0].mxu0 %v202_v11 }
  0xfc   :  { %v286_v13 = vpop.f32.mrb[0].mxu0 }
  0xfd   :  { %v287_v14 = vadd.f32 %v299_v12, %v286_v13  ;;  %v335_v15 = vpop.f32.mrb[1].mxu0 }
  0xfe   :  { %v289_v16 = vpop.f32.mrb[2].mxu0 }
  0xff   :  { %292 = vst [vmem:[%s464_s5] sm:$0xff] %v287_v14  ;;  %v336_v17 = vpop.f32.mrb[3].mxu0 }

</bundles_post_ra>
